<compile_context>
chip_gen: v7x
topology: tpu7x:2x2x1
jax: 0.10.0
libtpu: 0.0.40
codegen_flags: <defaults>
</compile_context>

<pallas_src>
import jax
import jax.numpy as jnp
from jax.experimental import pallas as pl
from jax.experimental.pallas import tpu as pltpu


_SQRT_HALF = 0.7071067811865476

# Scoped-VMEM limit we request (<= v7x 64 MiB physical, > v5e/v6e defaults) and
# the resident-footprint budget the tile selection targets.
_VMEM_LIMIT = 48 * 1024 * 1024
_VMEM_BUDGET = 40 * 1024 * 1024


def _round_up(x, m):
    return (x + m - 1) // m * m


def _cdiv(a, b):
    return (a + b - 1) // b


# ---------------------------------------------------------------------------
# Kernels
# ---------------------------------------------------------------------------
def _mlp_kernel_chunked(x_ref, w1_ref, b1_ref, w2_ref, b2_ref, o_ref, acc_ref):
    """Grid (token_tiles, mlp_chunks); fc2 partials accumulate in f32 scratch."""
    j = pl.program_id(1)

    # x streamed in its own dtype, cast to bf16 on the VPU; weights are bf16.
    x = x_ref[...].astype(jnp.bfloat16)
    h = jnp.dot(x, w1_ref[...], preferred_element_type=jnp.float32)
    h = h + b1_ref[...]
    # Exact (erf) GELU, matching torch.nn.GELU() default; erf lowers to EUP.
    h = 0.5 * h * (1.0 + jax.lax.erf(h * _SQRT_HALF))
    # TODO(synk): dropout1/dropout2 are identity in eval mode; training-mode
    # stochastic dropout (pltpu.prng_random_bits) is not implemented here.
    part = jnp.dot(h.astype(jnp.bfloat16), w2_ref[...],
                   preferred_element_type=jnp.float32)

    # First reduction step assigns (saves a zero-store + accumulator reload on
    # the vector-store slot); later steps accumulate.
    @pl.when(j == 0)
    def _first():
        acc_ref[...] = part

    @pl.when(j > 0)
    def _rest():
        acc_ref[...] += part

    @pl.when(j == pl.num_programs(1) - 1)
    def _finalize():
        o_ref[...] = (acc_ref[...] + b2_ref[...]).astype(o_ref.dtype)


def _mlp_kernel_resident(x_ref, w1_ref, b1_ref, w2_ref, b2_ref, o_ref):
    """Single mlp chunk (weights fully VMEM-resident): no accumulator RMW."""
    x = x_ref[...].astype(jnp.bfloat16)
    h = jnp.dot(x, w1_ref[...], preferred_element_type=jnp.float32)
    h = h + b1_ref[...]
    h = 0.5 * h * (1.0 + jax.lax.erf(h * _SQRT_HALF))
    out = jnp.dot(h.astype(jnp.bfloat16), w2_ref[...],
                  preferred_element_type=jnp.float32)
    o_ref[...] = (out + b2_ref[...]).astype(o_ref.dtype)


# ---------------------------------------------------------------------------
# Tile selection
# ---------------------------------------------------------------------------
def _estimate_vmem(tm, th, in_dim, out_dim, out_itemsize, n_chunks):
    x_bufs = 2 * tm * in_dim * 4            # x tile (f32), double-buffered
    w1_bufs = 2 * in_dim * th * 2           # bf16 W1 chunk, double-buffered
    w2_bufs = 2 * th * out_dim * 2          # bf16 W2 chunk, double-buffered
    b_bufs = 2 * (th + out_dim) * 4
    o_bufs = 2 * tm * out_dim * out_itemsize
    acc = tm * out_dim * 4 if n_chunks > 1 else 0
    h_tmp = 2 * tm * th * 4                 # fc1 result + GELU temporaries
    return x_bufs + w1_bufs + w2_bufs + b_bufs + o_bufs + acc + h_tmp


def _choose_tiles(N, in_dim, mlp_dim, out_dim, out_itemsize, tm_max, th_max):
    # Token-tile candidates, largest first.  For small problems a single
    # full-extent tile is always layout-legal; otherwise keep >= 2 token tiles
    # so the "parallel" axis shards across both v7x TensorCores.
    if N <= 512:
        tm_cands = [N]
    else:
        two_way = _round_up(_cdiv(N, 2), 16)
        tm_cands = sorted({min(t, two_way) for t in (tm_max, 1024, 512, 256)
                           if t <= tm_max}, reverse=True)

    # mlp-chunk candidates: weights fully VMEM-resident first (streamed from
    # HBM exactly once), then 128-aligned chunks.
    th_cands = [mlp_dim] + [t for t in (th_max, 1024, 512, 256, 128)
                            if t <= th_max and t < mlp_dim]
    th_cands = list(dict.fromkeys(th_cands))

    for th in th_cands:
        n_chunks = _cdiv(mlp_dim, th)
        for tm in tm_cands:
            if _estimate_vmem(tm, th, in_dim, out_dim, out_itemsize,
                              n_chunks) <= _VMEM_BUDGET:
                return tm, th
    return tm_cands[-1], th_cands[-1]


# ---------------------------------------------------------------------------
# Wrapper
# ---------------------------------------------------------------------------
def mlp_block(x, w1, b1, w2, b2, *, out_dtype=None, tm=None, th=None,
              tm_max=1024, th_max=1024):
    """out = fc2(dropout(gelu(fc1(x)))), dropout in eval (identity) mode.

    x: [batch, seq, in_dim] -> [batch, seq, out_dim].
    Explicit tm must be a multiple of 8 (or >= N); explicit th a multiple of
    128 (or >= mlp_dim).
    """
    B, S, in_dim = x.shape
    mlp_dim = w1.shape[1]
    out_dim = w2.shape[1]
    N = B * S
    out_dtype = x.dtype if out_dtype is None else out_dtype
    out_itemsize = jnp.dtype(out_dtype).itemsize

    if tm is None or th is None:
        tm_sel, th_sel = _choose_tiles(N, in_dim, mlp_dim, out_dim,
                                       out_itemsize, tm_max, th_max)
        tm = tm_sel if tm is None else tm
        th = th_sel if th is None else th
    tm = min(tm, N)
    th = min(th, mlp_dim)

    h_pad = _round_up(mlp_dim, th)
    n_chunks = h_pad // th

    # No token-axis pad / cast in the wrapper: x is streamed as-is and the
    # trailing partial token tile is handled by the bounded output writeback.
    x2d = x.reshape(N, in_dim)

    # Weights live in HBM as bf16 (re-streamed only when chunked); biases f32.
    w1b = w1.astype(jnp.bfloat16)
    w2b = w2.astype(jnp.bfloat16)
    b1f = b1.astype(jnp.float32).reshape(1, mlp_dim)
    b2f = b2.astype(jnp.float32).reshape(1, out_dim)
    if h_pad != mlp_dim:
        # Zero-padded mlp columns/rows contribute exactly zero to fc2.
        w1b = jnp.pad(w1b, ((0, 0), (0, h_pad - mlp_dim)))
        b1f = jnp.pad(b1f, ((0, 0), (0, h_pad - mlp_dim)))
        w2b = jnp.pad(w2b, ((0, h_pad - mlp_dim), (0, 0)))

    grid = (_cdiv(N, tm), n_chunks)

    in_specs = [
        pl.BlockSpec((tm, in_dim), lambda i, j: (i, 0)),     # x tile
        pl.BlockSpec((in_dim, th), lambda i, j: (0, j)),     # W1 chunk
        pl.BlockSpec((1, th), lambda i, j: (0, j)),          # b1 chunk
        pl.BlockSpec((th, out_dim), lambda i, j: (j, 0)),    # W2 chunk
        pl.BlockSpec((1, out_dim), lambda i, j: (0, 0)),     # b2
    ]
    out_spec = pl.BlockSpec((tm, out_dim), lambda i, j: (i, 0))

    if n_chunks == 1:
        kernel = _mlp_kernel_resident
        scratch_shapes = []
    else:
        kernel = _mlp_kernel_chunked
        scratch_shapes = [pltpu.VMEM((tm, out_dim), jnp.float32)]

    out2d = pl.pallas_call(
        kernel,
        out_shape=jax.ShapeDtypeStruct((N, out_dim), out_dtype),
        grid_spec=pltpu.PrefetchScalarGridSpec(
            num_scalar_prefetch=0,
            grid=grid,
            in_specs=in_specs,
            out_specs=out_spec,
            scratch_shapes=scratch_shapes,
        ),
        compiler_params=pltpu.CompilerParams(
            # Token axis shards across TensorCores (v7x megacore); the mlp
            # reduction axis must stay "arbitrary" (accumulator residency).
            dimension_semantics=("parallel", "arbitrary"),
            vmem_limit_bytes=_VMEM_LIMIT,
        ),
    )(x2d, w1b, b1f, w2b, b2f)

    return out2d.reshape(B, S, out_dim)


def reference_mlp(x, w1, b1, w2, b2):
    h = jnp.einsum("bsi,ih->bsh", x, w1) + b1
    h = 0.5 * h * (1.0 + jax.lax.erf(h * _SQRT_HALF))
    return jnp.einsum("bsh,ho->bso", h, w2) + b2


if __name__ == "__main__":
    key = jax.random.PRNGKey(0)

    def make_params(k, in_dim, mlp_dim, out_dim):
        k1, kb1, k2, kb2 = jax.random.split(k, 4)
        lim1 = 1.0 / jnp.sqrt(in_dim)
        lim2 = 1.0 / jnp.sqrt(mlp_dim)
        w1 = jax.random.uniform(k1, (in_dim, mlp_dim), jnp.float32, -lim1, lim1)
        b1 = jax.random.uniform(kb1, (mlp_dim,), jnp.float32, -lim1, lim1)
        w2 = jax.random.uniform(k2, (mlp_dim, out_dim), jnp.float32, -lim2, lim2)
        b2 = jax.random.uniform(kb2, (out_dim,), jnp.float32, -lim2, lim2)
        return w1, b1, w2, b2

    # Test 1: small ViT-FFN shapes, auto tiling (weights-resident path).
    kx, kp, key = jax.random.split(key, 3)
    batch, seq, in_dim, mlp_dim, out_dim = 2, 8, 32, 64, 32
    x = jax.random.normal(kx, (batch, seq, in_dim), dtype=jnp.float32)
    w1, b1, w2, b2 = make_params(kp, in_dim, mlp_dim, out_dim)
    out = jax.block_until_ready(mlp_block(x, w1, b1, w2, b2))
    ref = reference_mlp(x, w1, b1, w2, b2)
    assert out.shape == (batch, seq, out_dim)
    max_err = float(jnp.max(jnp.abs(out - ref)))
    # bf16 matmul operands (f32 accumulation) vs all-f32 reference.
    assert jnp.allclose(out, ref, atol=3e-2, rtol=3e-2), max_err

    # Test 2: force the chunked-reduction path (th < mlp_dim, mlp padding) and
    # a partial trailing token tile (N not a multiple of tm).
    kx2, kp2, key = jax.random.split(key, 3)
    b2_, s2_, in2, mlp2, od2 = 2, 20, 48, 320, 80
    x2 = jax.random.normal(kx2, (b2_, s2_, in2), dtype=jnp.float32)
    p2 = make_params(kp2, in2, mlp2, od2)
    o2 = jax.block_until_ready(mlp_block(x2, *p2, tm=16, th=128))
    r2 = reference_mlp(x2, *p2)
    assert o2.shape == (b2_, s2_, od2)
    max_err2 = float(jnp.max(jnp.abs(o2 - r2)))
    assert jnp.allclose(o2, r2, atol=3e-2, rtol=3e-2), max_err2

    print("KERNEL_OK")
</pallas_src>

<mosaic_0001>
module attributes {stable_mosaic.version = 11 : i64} {
  func.func @_mlp_kernel_resident(%arg0: i32, %arg1: i32, %arg2: memref<16x32xf32, #tpu.memory_space<vmem>>, %arg3: memref<32x64xbf16, #tpu.memory_space<vmem>>, %arg4: memref<1x64xf32, #tpu.memory_space<vmem>>, %arg5: memref<64x32xbf16, #tpu.memory_space<vmem>>, %arg6: memref<1x32xf32, #tpu.memory_space<vmem>>, %arg7: memref<16x32xf32, #tpu.memory_space<vmem>>) attributes {dimension_semantics = [#tpu.dimension_semantics<parallel>, #tpu.dimension_semantics<arbitrary>], iteration_bounds = array<i64: 1, 1>, scalar_prefetch = 0 : i64, scratch_operands = 0 : i64, tpu.core_type = #tpu.core_type<tc>, window_params = [{transform_indices = @transform_0, window_bounds = array<i64: 16, 32>}, {transform_indices = @transform_1, window_bounds = array<i64: 32, 64>}, {transform_indices = @transform_2, window_bounds = array<i64: 1, 64>}, {transform_indices = @transform_3, window_bounds = array<i64: 64, 32>}, {pipeline_mode = #tpu.pipeline_mode<synchronous>, transform_indices = @transform_4, window_bounds = array<i64: 1, 32>}, {transform_indices = @transform_5, window_bounds = array<i64: 16, 32>}]} {
    %c0 = arith.constant 0 : index
    %c0_0 = arith.constant 0 : index
    %0 = vector.load %arg2[%c0, %c0_0] : memref<16x32xf32, #tpu.memory_space<vmem>>, vector<16x32xf32>
    %1 = arith.truncf %0 : vector<16x32xf32> to vector<16x32xbf16>
    %c0_1 = arith.constant 0 : index
    %c0_2 = arith.constant 0 : index
    %2 = vector.load %arg3[%c0_1, %c0_2] : memref<32x64xbf16, #tpu.memory_space<vmem>>, vector<32x64xbf16>
    %cst = arith.constant dense<0.000000e+00> : vector<16x64xf32>
    %3 = tpu.matmul %1, %2, %cst {dimension_numbers = #tpu.dot_dimension_numbers<[1], [0], [0], [1], [0, 0, 1, 1], [], []>} : vector<16x32xbf16>, vector<32x64xbf16>, vector<16x64xf32> -> vector<16x64xf32>
    %c0_3 = arith.constant 0 : index
    %c0_4 = arith.constant 0 : index
    %4 = vector.load %arg4[%c0_3, %c0_4] : memref<1x64xf32, #tpu.memory_space<vmem>>, vector<1x64xf32>
    %5 = vector.broadcast %4 : vector<1x64xf32> to vector<16x64xf32>
    %6 = arith.addf %3, %5 : vector<16x64xf32>
    %cst_5 = arith.constant 5.000000e-01 : f32
    %7 = vector.broadcast %cst_5 : f32 to vector<16x64xf32>
    %8 = arith.mulf %7, %6 : vector<16x64xf32>
    %cst_6 = arith.constant 0.707106769 : f32
    %9 = vector.broadcast %cst_6 : f32 to vector<16x64xf32>
    %10 = arith.mulf %6, %9 : vector<16x64xf32>
    %11 = math.erf %10 : vector<16x64xf32>
    %cst_7 = arith.constant 1.000000e+00 : f32
    %12 = vector.broadcast %cst_7 : f32 to vector<16x64xf32>
    %13 = arith.addf %12, %11 : vector<16x64xf32>
    %14 = arith.mulf %8, %13 : vector<16x64xf32>
    %15 = arith.truncf %14 : vector<16x64xf32> to vector<16x64xbf16>
    %c0_8 = arith.constant 0 : index
    %c0_9 = arith.constant 0 : index
    %16 = vector.load %arg5[%c0_8, %c0_9] : memref<64x32xbf16, #tpu.memory_space<vmem>>, vector<64x32xbf16>
    %cst_10 = arith.constant dense<0.000000e+00> : vector<16x32xf32>
    %17 = tpu.matmul %15, %16, %cst_10 {dimension_numbers = #tpu.dot_dimension_numbers<[1], [0], [0], [1], [0, 0, 1, 1], [], []>} : vector<16x64xbf16>, vector<64x32xbf16>, vector<16x32xf32> -> vector<16x32xf32>
    %c0_11 = arith.constant 0 : index
    %c0_12 = arith.constant 0 : index
    %18 = vector.load %arg6[%c0_11, %c0_12] : memref<1x32xf32, #tpu.memory_space<vmem>>, vector<1x32xf32>
    %19 = vector.broadcast %18 : vector<1x32xf32> to vector<16x32xf32>
    %20 = arith.addf %17, %19 : vector<16x32xf32>
    %c0_13 = arith.constant 0 : index
    %c0_14 = arith.constant 0 : index
    %21 = vector.load %arg7[%c0_13, %c0_14] : memref<16x32xf32, #tpu.memory_space<vmem>>, vector<16x32xf32>
    tpu.vector_store %arg7[%c0_13, %c0_14], %20 {strides = array<i32>} : memref<16x32xf32, #tpu.memory_space<vmem>>, vector<16x32xf32>,
    return
  }
  func.func @transform_0(%arg0: i32, %arg1: i32) -> (i32, i32) {
    %c0_i32 = arith.constant 0 : i32
    %c0_i32_0 = arith.constant 0 : i32
    return %arg0, %c0_i32 : i32, i32
  }
  func.func @transform_1(%arg0: i32, %arg1: i32) -> (i32, i32) {
    %c0_i32 = arith.constant 0 : i32
    %c0_i32_0 = arith.constant 0 : i32
    return %c0_i32, %arg1 : i32, i32
  }
  func.func @transform_2(%arg0: i32, %arg1: i32) -> (i32, i32) {
    %c0_i32 = arith.constant 0 : i32
    %c0_i32_0 = arith.constant 0 : i32
    return %c0_i32, %arg1 : i32, i32
  }
  func.func @transform_3(%arg0: i32, %arg1: i32) -> (i32, i32) {
    %c0_i32 = arith.constant 0 : i32
    %c0_i32_0 = arith.constant 0 : i32
    return %arg1, %c0_i32 : i32, i32
  }
  func.func @transform_4(%arg0: i32, %arg1: i32) -> (i32, i32) {
    %c0_i32 = arith.constant 0 : i32
    %c0_i32_0 = arith.constant 0 : i32
    %c0_i32_1 = arith.constant 0 : i32
    return %c0_i32, %c0_i32_0 : i32, i32
  }
  func.func @transform_5(%arg0: i32, %arg1: i32) -> (i32, i32) {
    %c0_i32 = arith.constant 0 : i32
    %c0_i32_0 = arith.constant 0 : i32
    return %arg0, %c0_i32 : i32, i32
  }
}

</mosaic_0001>

<bundles_post_ra>
// kernel: tpu_custom_call.1
= control target key start
LH: loop header
LB: loop body
LE: loop exit
PB: predicated region body
PF: predicated region fallthrough
CT: control target
= control target key end

     0   :  { %v283_v1 = vmov 0.0   ;;  %vm284_vm0 = vmmov 0   ;;  %s363_s0 = inlined_call_operand.vmem [shape: f32[16,32], index: 0, kind: input, shape index: {}]   ;;  %s364_s1 = inlined_call_operand.vmem [shape: bf16[32,64], index: 1, kind: input, shape index: {}]   ;;  %s365_s2 = inlined_call_operand.vmem [shape: f32[1,64], index: 2, kind: input, shape index: {}]   ;;  %s366_s3 = inlined_call_operand.vmem [shape: bf16[64,32], index: 3, kind: input, shape index: {}]   ;;  %s367_s4 = inlined_call_operand.vmem [shape: f32[1,32], index: 4, kind: input, shape index: {}]   ;;  %s368_s5 = inlined_call_operand.hbm [shape: f32[16,32], index: 5, kind: output, shape index: {}]  }
   0x1   :  { %v249_v0 = vld [vmem:[%s364_s1] sm:$0xff]   ;;  %224 = vmatprep.subr.bf16.mxu0 %v283_v1  ;;  %232 = vmatprep.subr.bf16.mxu1 %v283_v1  ;;  %v250_v2 = vld [vmem:[%s364_s1 + $0x8] sm:$0xff]  }
   0x2   :  { %225 = vmatpush3.bf16.msra.mxu0 %v249_v0  ;;  %228 = vmatprep.mubr.msk.bf16.mxu0 %vm284_vm0, %v283_v1  ;;  %v22_v3 = vld [vmem:[%s363_s0] sm:$0xff]  ;;  %v23_v4 = vld [vmem:[%s363_s0 + $0x8] sm:$0xff] }
   0x3   :  { %226 = vmatprep.subr.bf16.mxu0 %v283_v1  ;;  %240 = vmatprep.mubr.msk.bf16.mxu1 %vm284_vm0, %v283_v1  ;;  %v24_v5 = vpack.c.bf16 %v23_v4, %v22_v3 }
   0x4   :  { %10 = vsyncpa [#allocation3], 0  ;;  %vm48_vm1 = vcmask 261120   ;;  %v251_v6 = vld [vmem:[%s366_s3] sm:$0xff]   ;;  %v252_v7 = vld [vmem:[%s366_s3 + $0x8] sm:$0xff]   ;;  %vm143_vm2 = vcmask 523264  }
   0x5   :  { %233 = vmatpush3.bf16.msra.mxu1 %v251_v6  ;;  %v253_v8 = vld [vmem:[%s366_s3 + $0x10] sm:$0xff]   ;;  %v254_v9 = vld [vmem:[%s366_s3 + $0x18] sm:$0xff]   ;;  %v206_v10 = vld [vmem:[%s365_s2] ss:$0 sm:$0xff]  ;;  %s285_s9 = smov [#allocation2]  }
   0x6   :  { %227 = vmatpush3.bf16.msra.mxu0 %v250_v2  ;;  %234 = vmatprep.subr.bf16.mxu1 %v283_v1  ;;  %v210_v28 = vld [vmem:[%s367_s4] ss:$0 sm:$0xff]  ;;  %s195_s10 = sshll.u32 %s285_s9, 4  ;;  %s196_s10 = int_to_ptr.vmem [resolvable:$true] %s195_s10 }
   0x7   :  { %s259_s11 = scalar_lea.vmem %s196_s10, 256  ;;  %p264_p1 = scmp.lt.s32.totalorder %s196_s10, %s196_s10 }
   0x8   :  { %p260_p0 = scmp.ne.s32.totalorder %s196_s10, %s259_s11  ;;  %p265_p2 = scmp.lt.s32.totalorder %s259_s11, %s259_s11 }
   0x9   :  { %229 = vmatmul.mubr.msk.bf16.vlgmr.msra.gmra.mrb[0].mxu0 %vm48_vm1, %v24_v5  ;;  %235 = vmatpush3.bf16.msra.mxu1 %v252_v7 }
   0xa   :  { %236 = vmatprep.subr.bf16.mxu1 %v283_v1  ;;  %p266_p3 = por %p265_p2, %p264_p1 }
   0xc   :  { %p267_p4 = pnand %p266_p3, %p260_p0 }
   0xd   :  { %237 = vmatpush3.bf16.msra.mxu1 %v253_v8 }
   0xe   :  { %238 = vmatprep.subr.bf16.mxu1 %v283_v1 }
  0x11   :  { %239 = vmatpush3.bf16.msra.mxu1 %v254_v9 }
  0xdc   :  { %v86_v11 = vpop.f32.mrb[0].mxu0 }
  0xdd   :  { %v87_v12 = vadd.f32 %v206_v10, %v86_v11  ;;  %v230_v13 = vpop.f32.mrb[1].mxu0 }
  0xde   :  { %v89_v14 = vpop.f32.mrb[2].mxu0 }
  0xdf   :  { %v95_v15 = vmul.f32 0.70710677, %v87_v12  ;;  %v90_v16 = vadd.f32 %v206_v10, %v89_v14  ;;  %v231_v17 = vpop.f32.mrb[3].mxu0  ;;  %v93_v22 = vmul.f32 0.5, %v87_v12 }
  0xe1   :  { %255 = verf.f32 %v95_v15  ;;  %v96_v18 = vmul.f32 0.70710677, %v90_v16  ;;  %v94_v23 = vmul.f32 0.5, %v90_v16 }
  0xe3   :  { %257 = verf.f32 %v96_v18 }
  0xeb   :  { %v256_v19 = vpop.eup %255 }
  0xec   :  { %v99_v20 = vadd.f32 1.0, %v256_v19 }
  0xed   :  { %v258_v21 = vpop.eup %257 }
  0xee   :  { %v100_v24 = vadd.f32 1.0, %v258_v21  ;;  %v101_v25 = vmul.f32 %v99_v20, %v93_v22 }
  0xf0   :  { %v102_v26 = vmul.f32 %v100_v24, %v94_v23 }
  0xf2   :  { %v103_v27 = vpack.c.bf16 %v102_v26, %v101_v25 }
  0xf4   :  { %241 = vmatmul.mubr.msk.bf16.vlgmr.msra.gmra.mrb[0].mxu1 %vm143_vm2, %v103_v27 }
 0x1c7   :  { %v181_v29 = vpop.f32.mrb[0].mxu1 }
 0x1c8   :  { %v182_v30 = vadd.f32 %v210_v28, %v181_v29  ;;  %v242_v31 = vpop.f32.mrb[1].mxu1 }
 0x1c9   :  { %v184_v32 = vpop.f32.mrb[2].mxu1 }
 0x1ca   :  { %188 = vst.msk [vmem:[#allocation2] sm:$0xff] %vm48_vm1, %v182_v30  ;;  %v185_v33 = vadd.f32 %v210_v28, %v184_v32  ;;  %v243_v34 = vpop.f32.mrb[3].mxu1 }
 0x1cc   :  { %189 = vst.msk [vmem:[#allocation2 + $0x8] sm:$0xff] %vm48_vm1, %v185_v33 }
 0x1cd   :  { %270 = shalt.err (!%p267_p4)
}
 0x1ce   :  { %s271_s13 = scalar_lea.hbm %s368_s5, 256 }
 0x1cf   :  { %p272_p5 = scmp.ne.s32.totalorder %s368_s5, %s271_s13  ;;  %p275_p6 = scmp.lt.u32.totalorder %s271_s13, %s368_s5 }
 0x1d1   :  { %p277_p7 = pnand %p275_p6, %p272_p5 }
 0x1d3   :  { %280 = shalt.err (!%p277_p7)
}
 0x1d4   :  { %s286_s18 = smov 128   ;;  %s287_s19 = smov 8  }
 0x1d5   :  { %201 = dma.vmem_to_hbm [thread:$0]  %s196_s10, 256, %s368_s5, [#allocation3], %s286_s18, %s286_s18, %s287_s19  }
 0x1d6   :  { %281 = dma.done.wait [#allocation3], 256  }
 0x1d7   :  { %282 = vsyncadd [#allocation3], 4294967040 }
 0x1d8   :  { %205 = vsyncpa [#allocation3], 1 }

</bundles_post_ra>
